<compile_context>
chip_gen: v5e
topology: v5e:2x2
jax: 0.10.0
libtpu: 0.0.40
codegen_flags: <defaults>
</compile_context>

<pallas_src>
import jax
import jax.numpy as jnp
from jax.experimental import pallas as pl
from jax.experimental.pallas import tpu as pltpu


def _copy_dma_kernel(x_hbm_ref, o_hbm_ref, sem):
    # One DMA descriptor covering the whole array: HBM -> HBM, no VMEM round-trip.
    cp = pltpu.make_async_copy(x_hbm_ref, o_hbm_ref, sem)
    cp.start()
    cp.wait()


def decoder_forward_copy(x):
    """Materialize a fresh buffer equal to x via a single HBM->HBM DMA."""
    return pl.pallas_call(
        _copy_dma_kernel,
        out_shape=jax.ShapeDtypeStruct(x.shape, x.dtype),
        in_specs=[pl.BlockSpec(memory_space=pl.ANY)],   # leave input in HBM
        out_specs=pl.BlockSpec(memory_space=pl.ANY),    # output stays in HBM
        scratch_shapes=[pltpu.SemaphoreType.DMA(())],
        compiler_params=pltpu.CompilerParams(has_side_effects=True),
    )(x)


def decoder_forward(x):
    """Pallas-era equivalent of Decoder(latent_size).forward(x).

    The forward pass is the identity, so the fastest correct implementation is
    to not launch a kernel at all (no HBM read, no HBM write, no ~0.35 us/step
    grid overhead, no custom-call launch cost). Callers that need a distinct
    output buffer should use decoder_forward_copy().
    """
    return x


if __name__ == "__main__":
    latent_size = 32
    batch = 2

    # Decoder.__init__ defines no parameters, so there is nothing to initialize.
    key = jax.random.PRNGKey(0)
    x = jax.random.normal(key, (batch, latent_size), dtype=jnp.float32)

    # Optimal identity path (no kernel, zero HBM traffic).
    y = decoder_forward(x)
    jax.block_until_ready(y)
    assert y.shape == x.shape and y.dtype == x.dtype
    assert bool(jnp.all(y == x))

    # Kernel-boundary path: single HBM->HBM DMA copy (run the kernel once).
    y_copy = decoder_forward_copy(x)
    jax.block_until_ready(y_copy)
    assert y_copy.shape == x.shape and y_copy.dtype == x.dtype
    assert bool(jnp.all(y_copy == x))

    print("KERNEL_OK")
</pallas_src>

<mosaic_0001>
module attributes {stable_mosaic.version = 11 : i64} {
  func.func @_copy_dma_kernel(%arg0: memref<2x32xf32, #tpu.memory_space<any>>, %arg1: memref<2x32xf32, #tpu.memory_space<any>>, %arg2: memref<!tpu.dma_semaphore, #tpu.memory_space<semaphore_mem>>) attributes {dimension_semantics = [], scalar_prefetch = 0 : i64, scratch_operands = 1 : i64, tpu.core_type = #tpu.core_type<tc>} {
    tpu.enqueue_dma source(%arg0 : memref<2x32xf32, #tpu.memory_space<any>>) target(%arg1 : memref<2x32xf32, #tpu.memory_space<any>>) target_semaphore(%arg2 : memref<!tpu.dma_semaphore, #tpu.memory_space<semaphore_mem>>)
    tpu.wait_dma2 semaphore(%arg2 : memref<!tpu.dma_semaphore, #tpu.memory_space<semaphore_mem>>) src(%arg0 : memref<2x32xf32, #tpu.memory_space<any>>) dst(%arg1 : memref<2x32xf32, #tpu.memory_space<any>>)
    return
  }
}

</mosaic_0001>

<bundles_post_ra>
// kernel: tpu_custom_call.1
= control target key start
LH: loop header
LB: loop body
LE: loop exit
PB: predicated region body
PF: predicated region fallthrough
CT: control target
= control target key end

     0   :  { %s32_s12 = smov [#allocation2]   ;;  %s33_s13 = smov [#allocation3]   ;;  %s51_s0 = inlined_call_operand.hbm [shape: f32[2,32], index: 0, kind: input, shape index: {}]   ;;  %s52_s1 = inlined_call_operand.hbm [shape: f32[2,32], index: 1, kind: output, shape index: {}]  }
   0x1   :  { %s10_s8 = sshll.u32 %s51_s0, 4  ;;  %s12_s11 = sshll.u32 %s52_s1, 4  ;;  %s11_s8 = int_to_ptr.hbm [resolvable:$true] %s10_s8  ;;  %s13_s11 = int_to_ptr.hbm [resolvable:$true] %s12_s11 }
   0x2   :  { %s34_s14 = smov 0  }
   0x3   :  { %16 = dma.general %s11_s8, 32, %s13_s11, %s32_s12, %s33_s13, [#allocation4], %s34_s14, 0  }
   0x4   :  { %30 = dma.done.wait [#allocation2], 32 }
   0x5   :  { %31 = vsyncadd [#allocation2], 4294967264 }
   0x6   :  { %20 = vsyncmov [#allocation2] }
   0x9   :  { %s21_s15 = vpop.sfrf %20 }
   0xa   :  { %p26_p0 = scmp.ne.s32.totalorder %s21_s15, 0 }
   0xc   :  { %25 = shalt.err (%p26_p0)  }

</bundles_post_ra>
